<compile_context>
chip_gen: v7x
topology: tpu7x:2x2x1
jax: 0.10.0
libtpu: 0.0.40
codegen_flags: <defaults>
</compile_context>

<pallas_src>
import functools

import jax
import jax.numpy as jnp
from jax.experimental import pallas as pl
from jax.experimental.pallas import tpu as pltpu


# ---------------------------------------------------------------------------
# Kernel body
# ---------------------------------------------------------------------------
def _film1d_kernel(x_ref, g_ref, b_ref, o_ref, *, compute_dtype):
    # x_ref / o_ref : (TR, TL)      g_ref / b_ref : (TR, 1)
    x = x_ref[...].astype(compute_dtype)
    g = g_ref[...].astype(compute_dtype)   # lane broadcast (cheap VPU op)
    b = b_ref[...].astype(compute_dtype)
    o_ref[...] = (g * x + b).astype(o_ref.dtype)


# ---------------------------------------------------------------------------
# Generation-aware configuration
# ---------------------------------------------------------------------------
def _vmem_capacity_bytes() -> int:
    try:
        info = pltpu.get_tpu_info()
        cap = getattr(info, "vmem_capacity_bytes", None)
        if cap:
            return int(cap)
    except Exception:
        pass
    return 64 * 1024 * 1024  # conservative (v7x-sized) fallback


def _generation_params() -> tuple[int, int]:
    """Returns (per-buffer tile budget bytes, vmem_limit_bytes)."""
    cap = _vmem_capacity_bytes()
    if cap >= 96 * 1024 * 1024:
        # v5e / v6e: 128 MiB physical VMEM -> 8 MiB tiles, 64 MiB scoped limit.
        return 8 * 1024 * 1024, 64 * 1024 * 1024
    # v7x: 64 MiB physical VMEM -> 4 MiB tiles, 40 MiB scoped limit (headroom).
    return 4 * 1024 * 1024, 40 * 1024 * 1024


def _native_bf16_vpu() -> bool:
    """True on chips with a bf16 VPU (v6e / v7x); False on v2-v5."""
    try:
        kind = jax.devices()[0].device_kind.lower()
    except Exception:
        return False
    return not any(v in kind for v in ("v2", "v3", "v4", "v5"))


# ---------------------------------------------------------------------------
# Tile selection
# ---------------------------------------------------------------------------
_SPLIT_THRESHOLD_BYTES = 2 * 1024 * 1024  # only split the row axis above this


def _pick_block(dim: int, preferred: int, align: int) -> int:
    """Largest legal block <= min(preferred, dim); full extent always legal."""
    if preferred >= dim:
        return dim
    return min(dim, max(align, (preferred // align) * align))


def _select_tiles(R: int, L: int, itemsize: int, budget_bytes: int,
                  sub_align: int) -> tuple[int, int]:
    """Auto tile selection: prefer contiguous full-row tiles, then grow rows."""
    row_bytes = L * itemsize
    if sub_align * row_bytes <= budget_bytes:
        # Full rows: each tile is one contiguous HBM transfer, no ragged L edge.
        tl = L
        rows_fit = budget_bytes // row_bytes
        tr = min(R, (rows_fit // sub_align) * sub_align)
        tr = max(tr, min(R, sub_align))
        # Keep >=2 row-blocks on non-trivial problems so both TensorCores
        # (v7x megacore) get sharded work on the parallel row axis.
        if tr >= R and R > sub_align and R * row_bytes >= _SPLIT_THRESHOLD_BYTES:
            half = (R + 1) // 2
            tr = min(R, ((half + sub_align - 1) // sub_align) * sub_align)
        return tr, tl
    # Very long rows: tile the lane axis as large as the budget allows.
    tr = min(R, sub_align)
    tl_elems = budget_bytes // max(1, tr * itemsize)
    tl = min(L, max(128, (tl_elems // 128) * 128))
    return tr, tl


# ---------------------------------------------------------------------------
# Public wrapper
# ---------------------------------------------------------------------------
def film1d(
    x: jax.Array,
    gamma: jax.Array,
    beta: jax.Array,
    *,
    block_rows: int | None = None,
    block_len: int | None = None,
    alias_input: bool = False,
) -> jax.Array:
    """FiLM1d forward: out[b, c, l] = gamma[b, c] * x[b, c, l] + beta[b, c].

    block_rows / block_len: optional manual tile overrides (auto when None).
    alias_input: reuse x's buffer for the output.  WARNING: only set this when
      x is donated / never read again by the caller — the output aliases x's
      HBM storage and overwrites it in place.
    """
    B, C, L = x.shape
    assert gamma.shape == (B, C) and beta.shape == (B, C)
    R = B * C

    itemsize = jnp.dtype(x.dtype).itemsize
    sub_align = 8 * max(1, 4 // itemsize)        # 8 (f32) / 16 (bf16) / 32 (int8)

    tile_budget, vmem_limit = _generation_params()

    if block_rows is None and block_len is None:
        tr, tl = _select_tiles(R, L, itemsize, tile_budget, sub_align)
    else:
        tr = _pick_block(R, block_rows if block_rows is not None else 256, sub_align)
        tl = _pick_block(L, block_len if block_len is not None else 1024, 128)

    # bf16 inputs: keep native bf16 math on v6e/v7x (halves vreg/VMEM pressure);
    # upcast to f32 on pre-v6 chips (no bf16 VPU) and for all other dtypes.
    if x.dtype == jnp.bfloat16 and _native_bf16_vpu():
        compute_dtype = jnp.bfloat16
    else:
        compute_dtype = jnp.float32

    # Free, contiguous views: (B, C, L) -> (B*C, L); gamma/beta -> (B*C, 1).
    x2 = x.reshape(R, L)
    g2 = gamma.reshape(R, 1)
    b2 = beta.reshape(R, 1)

    grid = (pl.cdiv(R, tr), pl.cdiv(L, tl))

    gb_itemsize = jnp.dtype(gamma.dtype).itemsize
    cost = pl.CostEstimate(
        flops=2 * R * L,
        transcendentals=0,
        bytes_accessed=2 * R * L * itemsize + 2 * R * gb_itemsize,
    )

    kernel = functools.partial(_film1d_kernel, compute_dtype=compute_dtype)

    out2 = pl.pallas_call(
        kernel,
        out_shape=jax.ShapeDtypeStruct((R, L), x.dtype),
        grid_spec=pltpu.PrefetchScalarGridSpec(
            num_scalar_prefetch=0,
            grid=grid,
            in_specs=[
                pl.BlockSpec((tr, tl), lambda r, l: (r, l)),  # x tile
                pl.BlockSpec((tr, 1), lambda r, l: (r, 0)),   # gamma (held across L)
                pl.BlockSpec((tr, 1), lambda r, l: (r, 0)),   # beta  (held across L)
            ],
            out_specs=pl.BlockSpec((tr, tl), lambda r, l: (r, l)),
        ),
        compiler_params=pltpu.CompilerParams(
            dimension_semantics=("parallel", "parallel"),
            vmem_limit_bytes=vmem_limit,
        ),
        cost_estimate=cost,
        input_output_aliases=({0: 0} if alias_input else {}),
    )(x2, g2, b2)

    return out2.reshape(B, C, L)


# ---------------------------------------------------------------------------
# Self-test
# ---------------------------------------------------------------------------
if __name__ == "__main__":
    key = jax.random.PRNGKey(0)
    kx, kg, kb = jax.random.split(key, 3)

    # Small, deliberately ragged vs. (8, 128) tiles to exercise edge handling.
    B, C, L = 2, 24, 416
    x = jax.random.normal(kx, (B, C, L), dtype=jnp.float32)
    gamma = jax.random.normal(kg, (B, C), dtype=jnp.float32)
    beta = jax.random.normal(kb, (B, C), dtype=jnp.float32)

    ref = gamma[:, :, None] * x + beta[:, :, None]

    # 1) Auto (generation-aware) tiles -> contiguous full-row single-block path.
    out = jax.block_until_ready(film1d(x, gamma, beta))
    assert out.shape == x.shape and out.dtype == x.dtype
    assert jnp.allclose(out, ref, atol=1e-5, rtol=1e-5)

    # 2) Forced small tiles -> real multi-step 2-D grid with a ragged L edge.
    out_tiled = jax.block_until_ready(
        film1d(x, gamma, beta, block_rows=16, block_len=128)
    )
    assert jnp.allclose(out_tiled, ref, atol=1e-5, rtol=1e-5)

    # 3) Forced small row-tile with full rows -> multi-block parallel row axis.
    out_rows = jax.block_until_ready(film1d(x, gamma, beta, block_rows=8))
    assert jnp.allclose(out_rows, ref, atol=1e-5, rtol=1e-5)

    # 4) bf16 path (native bf16 math on v6e/v7x, f32 upcast on older chips).
    xb = x.astype(jnp.bfloat16)
    gb = gamma.astype(jnp.bfloat16)
    bb = beta.astype(jnp.bfloat16)
    out_bf16 = jax.block_until_ready(film1d(xb, gb, bb, block_rows=16, block_len=128))
    ref_bf16 = (
        gb.astype(jnp.float32)[:, :, None] * xb.astype(jnp.float32)
        + bb.astype(jnp.float32)[:, :, None]
    ).astype(jnp.bfloat16)
    assert out_bf16.dtype == jnp.bfloat16
    assert jnp.allclose(
        out_bf16.astype(jnp.float32), ref_bf16.astype(jnp.float32), atol=2e-2, rtol=2e-2
    )

    print("KERNEL_OK")
</pallas_src>

<mosaic_0001>
module attributes {stable_mosaic.version = 11 : i64} {
  func.func @_film1d_kernel(%arg0: i32, %arg1: i32, %arg2: memref<48x416xf32, #tpu.memory_space<vmem>>, %arg3: memref<48x1xf32, #tpu.memory_space<vmem>>, %arg4: memref<48x1xf32, #tpu.memory_space<vmem>>, %arg5: memref<48x416xf32, #tpu.memory_space<vmem>>) attributes {dimension_semantics = [#tpu.dimension_semantics<parallel>, #tpu.dimension_semantics<parallel>], iteration_bounds = array<i64: 1, 1>, scalar_prefetch = 0 : i64, scratch_operands = 0 : i64, tpu.core_type = #tpu.core_type<tc>, window_params = [{transform_indices = @transform_0, window_bounds = array<i64: 48, 416>}, {transform_indices = @transform_1, window_bounds = array<i64: 48, 1>}, {transform_indices = @transform_2, window_bounds = array<i64: 48, 1>}, {transform_indices = @transform_3, window_bounds = array<i64: 48, 416>}]} {
    %c0 = arith.constant 0 : index
    %c0_0 = arith.constant 0 : index
    %0 = vector.load %arg2[%c0, %c0_0] : memref<48x416xf32, #tpu.memory_space<vmem>>, vector<48x416xf32>
    %c0_1 = arith.constant 0 : index
    %c0_2 = arith.constant 0 : index
    %1 = vector.load %arg3[%c0_1, %c0_2] : memref<48x1xf32, #tpu.memory_space<vmem>>, vector<48x1xf32>
    %c0_3 = arith.constant 0 : index
    %c0_4 = arith.constant 0 : index
    %2 = vector.load %arg4[%c0_3, %c0_4] : memref<48x1xf32, #tpu.memory_space<vmem>>, vector<48x1xf32>
    %3 = vector.broadcast %1 : vector<48x1xf32> to vector<48x416xf32>
    %4 = arith.mulf %3, %0 : vector<48x416xf32>
    %5 = vector.broadcast %2 : vector<48x1xf32> to vector<48x416xf32>
    %6 = arith.addf %4, %5 : vector<48x416xf32>
    %c0_5 = arith.constant 0 : index
    %c0_6 = arith.constant 0 : index
    %7 = vector.load %arg5[%c0_5, %c0_6] : memref<48x416xf32, #tpu.memory_space<vmem>>, vector<48x416xf32>
    tpu.vector_store %arg5[%c0_5, %c0_6], %6 {strides = array<i32>} : memref<48x416xf32, #tpu.memory_space<vmem>>, vector<48x416xf32>,
    return
  }
  func.func @transform_0(%arg0: i32, %arg1: i32) -> (i32, i32) {
    %c0_i32 = arith.constant 0 : i32
    return %arg0, %arg1 : i32, i32
  }
  func.func @transform_1(%arg0: i32, %arg1: i32) -> (i32, i32) {
    %c0_i32 = arith.constant 0 : i32
    %c0_i32_0 = arith.constant 0 : i32
    return %arg0, %c0_i32 : i32, i32
  }
  func.func @transform_2(%arg0: i32, %arg1: i32) -> (i32, i32) {
    %c0_i32 = arith.constant 0 : i32
    %c0_i32_0 = arith.constant 0 : i32
    return %arg0, %c0_i32 : i32, i32
  }
  func.func @transform_3(%arg0: i32, %arg1: i32) -> (i32, i32) {
    %c0_i32 = arith.constant 0 : i32
    return %arg0, %arg1 : i32, i32
  }
}

</mosaic_0001>

<bundles_post_ra>
// kernel: tpu_custom_call.1
= control target key start
LH: loop header
LB: loop body
LE: loop exit
PB: predicated region body
PF: predicated region fallthrough
CT: control target
= control target key end

     0   :  { %8 = vsyncpa [#allocation3], 0  ;;  %s379_s0 = inlined_call_operand.hbm [shape: f32[48,416], index: 0, kind: input, shape index: {}]   ;;  %s380_s1 = inlined_call_operand.vmem [shape: f32[48,1], index: 1, kind: input, shape index: {}]   ;;  %s381_s2 = inlined_call_operand.vmem [shape: f32[48,1], index: 2, kind: input, shape index: {}]   ;;  %s382_s3 = inlined_call_operand.hbm [shape: f32[48,416], index: 3, kind: output, shape index: {}]  }
   0x1   :  { %9 = vsyncpa [#allocation4], 0  ;;  %s270_s12 = smov [#allocation2]   ;;  %s222_s16 = scalar_lea.hbm %s379_s0, 3072 }
   0x2   :  { %s15_s13 = sshll.u32 %s270_s12, 4  ;;  %p223_p0 = scmp.ne.s32.totalorder %s379_s0, %s222_s16  ;;  %s16_s13 = int_to_ptr.vmem [resolvable:$true] %s15_s13 }
   0x3   :  { %p226_p1 = scmp.lt.u32.totalorder %s222_s16, %s379_s0 }
   0x5   :  { %p228_p2 = pnand %p226_p1, %p223_p0 }
   0x7   :  { %231 = shalt.err (!%p228_p2)
}
   0x8   :  { %s232_s21 = scalar_lea.vmem %s16_s13, 3072  ;;  %p237_p4 = scmp.lt.s32.totalorder %s16_s13, %s16_s13 }
   0x9   :  { %p233_p3 = scmp.ne.s32.totalorder %s16_s13, %s232_s21  ;;  %p238_p5 = scmp.lt.s32.totalorder %s232_s21, %s232_s21 }
   0xb   :  { %p239_p6 = por %p238_p5, %p237_p4 }
   0xd   :  { %p240_p7 = pnand %p239_p6, %p233_p3 }
   0xf   :  { %243 = shalt.err (!%p240_p7)
}
  0x10   :  { %s271_s22 = smov 512   ;;  %s272_s23 = smov 32  }
  0x11   :  { %21 = dma.hbm_to_vmem [thread:$0]  %s379_s0, 3072, %s16_s13, [#allocation3], %s271_s22, %s271_s22, %s272_s23  }
  0x12   :  { %266 = dma.done.wait [#allocation3], 3072  }
  0x13   :  { %267 = vsyncadd [#allocation3], 4294964224  ;;  %v273_v0 = vmov 0   ;;  %v55_v1 = vld [vmem:[%s380_s1 + $0x10] sm:$0xff]  ;;  %v53_v2 = vld [vmem:[%s380_s1] sm:$0xff]  ;;  %vm176_vm0 = vcmask 261120  }
  0x14   :  { %221 = vset.pattern.permute.xlu1 %v273_v0  ;;  %220 = vset.pattern.permute.xlu0 %v273_v0  ;;  %v56_v3 = vld [vmem:[%s380_s1 + $0x18] sm:$0xff]  ;;  %v54_v4 = vld [vmem:[%s380_s1 + $0x8] sm:$0xff]  ;;  %v57_v6 = vld [vmem:[%s380_s1 + $0x20] sm:$0xff] }
  0x15   :  { %77 = vperm.xlu1 %221, %v55_v1   ;;  %67 = vperm.xlu0 %220, %v53_v2   ;;  %v58_v5 = vld [vmem:[%s380_s1 + $0x28] sm:$0xff]  ;;  %v59_v8 = vld [vmem:[%s381_s2] sm:$0xff]  ;;  %v62_v9 = vld [vmem:[%s381_s2 + $0x18] sm:$0xff] }
  0x16   :  { %v60_v7 = vld [vmem:[%s381_s2 + $0x8] sm:$0xff]  ;;  %v61_v10 = vld [vmem:[%s381_s2 + $0x10] sm:$0xff]  ;;  %v63_v12 = vld [vmem:[%s381_s2 + $0x20] sm:$0xff] }
  0x17   :  { %v64_v11 = vld [vmem:[%s381_s2 + $0x28] sm:$0xff]  ;;  %v29_v17 = vld [vmem:[#allocation2] sm:$0xff]  ;;  %v35_v20 = vld [vmem:[#allocation2 + $0x30] sm:$0xff]  ;;  %s274_s2 = smov [#allocation5]  }
  0x18   :  { %v33_v18 = vld [vmem:[#allocation2 + $0x20] sm:$0xff]  ;;  %v34_v19 = vld [vmem:[#allocation2 + $0x28] sm:$0xff]  ;;  %v36_v21 = vld [vmem:[#allocation2 + $0x38] sm:$0xff]  ;;  %s203_s21 = sshll.u32 %s274_s2, 4  ;;  %s204_s21 = int_to_ptr.vmem [resolvable:$true] %s203_s21 }
  0x19   :  { %82 = vperm.xlu1 %221, %v56_v3   ;;  %72 = vperm.xlu0 %220, %v54_v4   ;;  %v30_v24 = vld [vmem:[#allocation2 + $0x8] sm:$0xff]  ;;  %v31_v25 = vld [vmem:[#allocation2 + $0x10] sm:$0xff]  ;;  %v32_v26 = vld [vmem:[#allocation2 + $0x18] sm:$0xff]  ;;  %s244_s24 = scalar_lea.vmem %s204_s21, 3072  ;;  %p249_p9 = scmp.lt.s32.totalorder %s204_s21, %s204_s21 }
  0x1a   :  { %v37_v27 = vld [vmem:[#allocation2 + $0x40] sm:$0xff]  ;;  %v42_v37 = vld [vmem:[#allocation2 + $0x68] sm:$0xff]  ;;  %v43_v38 = vld [vmem:[#allocation2 + $0x70] sm:$0xff]  ;;  %p245_p8 = scmp.ne.s32.totalorder %s204_s21, %s244_s24  ;;  %p250_p10 = scmp.lt.s32.totalorder %s244_s24, %s244_s24 }
  0x1b   :  { %v41_v28 = vld [vmem:[#allocation2 + $0x60] sm:$0xff]  ;;  %v44_v39 = vld [vmem:[#allocation2 + $0x78] sm:$0xff]  ;;  %v38_v42 = vld [vmem:[#allocation2 + $0x48] sm:$0xff] }
  0x1c   :  { %v39_v43 = vld [vmem:[#allocation2 + $0x50] sm:$0xff]  ;;  %v40_v44 = vld [vmem:[#allocation2 + $0x58] sm:$0xff]  ;;  %v49_v57 = vld [vmem:[#allocation2 + $0xa0] sm:$0xff]  ;;  %p251_p11 = por %p250_p10, %p249_p9 }
  0x1d   :  { %92 = vperm.xlu1 %221, %v58_v5   ;;  %87 = vperm.xlu0 %220, %v57_v6   ;;  %v50_v58 = vld [vmem:[#allocation2 + $0xa8] sm:$0xff]  ;;  %v51_v1 = vld [vmem:[#allocation2 + $0xb0] sm:$0xff]  ;;  %v52_v2 = vld [vmem:[#allocation2 + $0xb8] sm:$0xff] }
  0x1e   :  { %v45_v3 = vld [vmem:[#allocation2 + $0x80] sm:$0xff]  ;;  %p252_p12 = pnand %p251_p11, %p245_p8 }
  0x21   :  { %126 = vperm.xlu1 %221, %v60_v7   ;;  %121 = vperm.xlu0 %220, %v59_v8   ;;  %v46_v8 = vld [vmem:[#allocation2 + $0x88] sm:$0xff] }
  0x25   :  { %136 = vperm.xlu1 %221, %v62_v9   ;;  %131 = vperm.xlu0 %220, %v61_v10   ;;  %v47_v9 = vld [vmem:[#allocation2 + $0x90] sm:$0xff]  ;;  %v48_v10 = vld [vmem:[#allocation2 + $0x98] sm:$0xff] }
  0x29   :  { %146 = vperm.xlu1 %221, %v64_v11   ;;  %141 = vperm.xlu0 %220, %v63_v12  }
  0x94   :  { %v78_v13 = vpop.permute.xlu1 %77  ;;  %v68_v14 = vpop.permute.xlu0 %67 }
  0x95   :  { %v95_v33 = vmul.f32 %v68_v14, %v29_v17  ;;  %v96_v34 = vmul.f32 %v68_v14, %v30_v24  ;;  %v97_v35 = vmul.f32 %v68_v14, %v31_v25  ;;  %v98_v36 = vmul.f32 %v68_v14, %v32_v26 }
  0x96   :  { %v103_v59 = vmul.f32 %v78_v13, %v37_v27  ;;  %v104_v60 = vmul.f32 %v78_v13, %v38_v42  ;;  %v105_v61 = vmul.f32 %v78_v13, %v39_v43  ;;  %v106_v62 = vmul.f32 %v78_v13, %v40_v44 }
  0x98   :  { %v83_v15 = vpop.permute.xlu1 %82  ;;  %v73_v16 = vpop.permute.xlu0 %72 }
  0x99   :  { %v99_v29 = vmul.f32 %v73_v16, %v33_v18  ;;  %v100_v30 = vmul.f32 %v73_v16, %v34_v19  ;;  %v101_v31 = vmul.f32 %v73_v16, %v35_v20  ;;  %v102_v32 = vmul.f32 %v73_v16, %v36_v21 }
  0x9a   :  { %v107_v53 = vmul.f32 %v83_v15, %v41_v28  ;;  %v108_v54 = vmul.f32 %v83_v15, %v42_v37  ;;  %v109_v55 = vmul.f32 %v83_v15, %v43_v38  ;;  %v110_v56 = vmul.f32 %v83_v15, %v44_v39 }
  0x9c   :  { %v346_v22 = vpop.permute.xlu1 %92  ;;  %v348_v23 = vpop.permute.xlu0 %87 }
  0x9d   :  { %v115_v15 = vmul.f32 %v346_v22, %v49_v57  ;;  %v116_v16 = vmul.f32 %v346_v22, %v50_v58  ;;  %v117_v17 = vmul.f32 %v346_v22, %v51_v1  ;;  %v118_v18 = vmul.f32 %v346_v22, %v52_v2 }
  0x9e   :  { %v111_v21 = vmul.f32 %v348_v23, %v45_v3  ;;  %v112_v24 = vmul.f32 %v348_v23, %v46_v8  ;;  %v113_v25 = vmul.f32 %v348_v23, %v47_v9  ;;  %v114_v26 = vmul.f32 %v348_v23, %v48_v10 }
  0xa0   :  { %v127_v40 = vpop.permute.xlu1 %126  ;;  %v122_v41 = vpop.permute.xlu0 %121 }
  0xa1   :  { %v153_v45 = vadd.f32 %v127_v40, %v99_v29  ;;  %v154_v46 = vadd.f32 %v127_v40, %v100_v30  ;;  %v155_v47 = vadd.f32 %v127_v40, %v101_v31  ;;  %v156_v48 = vadd.f32 %v127_v40, %v102_v32 }
  0xa2   :  { %v149_v49 = vadd.f32 %v122_v41, %v95_v33  ;;  %v150_v50 = vadd.f32 %v122_v41, %v96_v34  ;;  %v151_v51 = vadd.f32 %v122_v41, %v97_v35  ;;  %v152_v52 = vadd.f32 %v122_v41, %v98_v36 }
  0xa3   :  { %178 = vst [vmem:[#allocation5 + $0x20] sm:$0xff] %v153_v45  ;;  %179 = vst [vmem:[#allocation5 + $0x28] sm:$0xff] %v154_v46 }
  0xa4   :  { %180 = vst [vmem:[#allocation5 + $0x30] sm:$0xff] %v155_v47  ;;  %181 = vst.msk [vmem:[#allocation5 + $0x38] sm:$0xff] %vm176_vm0, %v156_v48  ;;  %v137_v63 = vpop.permute.xlu1 %136  ;;  %v132_v0 = vpop.permute.xlu0 %131 }
  0xa5   :  { %173 = vst [vmem:[#allocation5] sm:$0xff] %v149_v49  ;;  %174 = vst [vmem:[#allocation5 + $0x8] sm:$0xff] %v150_v50  ;;  %v161_v4 = vadd.f32 %v137_v63, %v107_v53  ;;  %v162_v5 = vadd.f32 %v137_v63, %v108_v54  ;;  %v163_v6 = vadd.f32 %v137_v63, %v109_v55 }
  0xa6   :  { %175 = vst [vmem:[#allocation5 + $0x10] sm:$0xff] %v151_v51  ;;  %177 = vst.msk [vmem:[#allocation5 + $0x18] sm:$0xff] %vm176_vm0, %v152_v52  ;;  %v164_v7 = vadd.f32 %v137_v63, %v110_v56  ;;  %v157_v11 = vadd.f32 %v132_v0, %v103_v59  ;;  %v158_v12 = vadd.f32 %v132_v0, %v104_v60 }
  0xa7   :  { %v159_v13 = vadd.f32 %v132_v0, %v105_v61  ;;  %v160_v14 = vadd.f32 %v132_v0, %v106_v62  ;;  %186 = vst [vmem:[#allocation5 + $0x60] sm:$0xff] %v161_v4  ;;  %187 = vst [vmem:[#allocation5 + $0x68] sm:$0xff] %v162_v5 }
  0xa8   :  { %188 = vst [vmem:[#allocation5 + $0x70] sm:$0xff] %v163_v6  ;;  %189 = vst.msk [vmem:[#allocation5 + $0x78] sm:$0xff] %vm176_vm0, %v164_v7  ;;  %v147_v19 = vpop.permute.xlu1 %146  ;;  %v142_v20 = vpop.permute.xlu0 %141 }
  0xa9   :  { %182 = vst [vmem:[#allocation5 + $0x40] sm:$0xff] %v157_v11  ;;  %183 = vst [vmem:[#allocation5 + $0x48] sm:$0xff] %v158_v12  ;;  %v169_v27 = vadd.f32 %v147_v19, %v115_v15  ;;  %v170_v28 = vadd.f32 %v147_v19, %v116_v16  ;;  %v171_v22 = vadd.f32 %v147_v19, %v117_v17 }
  0xaa   :  { %184 = vst [vmem:[#allocation5 + $0x50] sm:$0xff] %v159_v13  ;;  %185 = vst.msk [vmem:[#allocation5 + $0x58] sm:$0xff] %vm176_vm0, %v160_v14  ;;  %v172_v29 = vadd.f32 %v147_v19, %v118_v18  ;;  %v165_v30 = vadd.f32 %v142_v20, %v111_v21  ;;  %v166_v31 = vadd.f32 %v142_v20, %v112_v24 }
  0xab   :  { %v167_v32 = vadd.f32 %v142_v20, %v113_v25  ;;  %v168_v33 = vadd.f32 %v142_v20, %v114_v26  ;;  %194 = vst [vmem:[#allocation5 + $0xa0] sm:$0xff] %v169_v27  ;;  %195 = vst [vmem:[#allocation5 + $0xa8] sm:$0xff] %v170_v28 }
  0xac   :  { %196 = vst [vmem:[#allocation5 + $0xb0] sm:$0xff] %v171_v22  ;;  %197 = vst.msk [vmem:[#allocation5 + $0xb8] sm:$0xff] %vm176_vm0, %v172_v29 }
  0xad   :  { %190 = vst [vmem:[#allocation5 + $0x80] sm:$0xff] %v165_v30  ;;  %191 = vst [vmem:[#allocation5 + $0x88] sm:$0xff] %v166_v31 }
  0xae   :  { %192 = vst [vmem:[#allocation5 + $0x90] sm:$0xff] %v167_v32  ;;  %193 = vst.msk [vmem:[#allocation5 + $0x98] sm:$0xff] %vm176_vm0, %v168_v33 }
  0xaf   :  { %255 = shalt.err (!%p252_p12)
}
  0xb0   :  { %s256_s27 = scalar_lea.hbm %s382_s3, 3072 }
  0xb1   :  { %p257_p13 = scmp.ne.s32.totalorder %s382_s3, %s256_s27  ;;  %p260_p0 = scmp.lt.u32.totalorder %s256_s27, %s382_s3 }
  0xb3   :  { %p262_p1 = pnand %p260_p0, %p257_p13 }
  0xb5   :  { %265 = shalt.err (!%p262_p1)
}
  0xb6   :  { %209 = dma.vmem_to_hbm [thread:$0]  %s204_s21, 3072, %s382_s3, [#allocation4], %s271_s22, %s271_s22, %s272_s23  }
  0xb7   :  { %268 = dma.done.wait [#allocation4], 3072  }
  0xb8   :  { %269 = vsyncadd [#allocation4], 4294964224 }
  0xb9   :  { %213 = vsyncpa [#allocation3], 1 }
  0xba   :  { %214 = vsyncpa [#allocation4], 1 }

</bundles_post_ra>
